<compile_context>
chip_gen: v6e
topology: v6e:2x2x1
jax: 0.10.0
libtpu: 0.0.40
codegen_flags: <defaults>
</compile_context>

<pallas_src>
import functools

import jax
import jax.numpy as jnp
import numpy as np
from jax.experimental import pallas as pl
from jax.experimental.pallas import tpu as pltpu

_LANE = 128
_SUBLANE = 8


def _round_up(x: int, m: int) -> int:
    return ((x + m - 1) // m) * m


def _sdpa_kernel(q_ref, k_ref, v_ref, o_ref, acc_ref, *, scale):
    kt = pl.program_id(1)

    @pl.when(kt == 0)
    def _init():
        acc_ref[...] = jnp.zeros_like(acc_ref)

    # Fold the 1/sqrt(dim) scale into q (smallest operand), then feed the MXU
    # with bf16 operands and f32 accumulation.
    q = (q_ref[...].astype(jnp.float32) * scale).astype(jnp.bfloat16)
    k = k_ref[...].astype(jnp.bfloat16)

    # scores[b, i, j] = sum_d q[b, i, d] * k[b, j, d]   (== bmm(q, k^T) / sqrt(dim))
    scores = jnp.einsum("bqd,bkd->bqk", q, k,
                        preferred_element_type=jnp.float32)

    # F.softmax with implicit dim -> dim=0 (batch axis) for a 3-D input.
    # The batch axis is whole inside every tile, so this softmax is exact per tile.
    m = jnp.max(scores, axis=0, keepdims=True)
    e = jnp.exp(scores - m)
    denom = jnp.sum(e, axis=0, keepdims=True)
    p = e * pl.reciprocal(denom, approx=True)

    # attention = bmm(softmax, value); accumulate over the Tk grid axis in f32.
    acc_ref[...] += jnp.einsum("bqk,bkd->bqd",
                               p.astype(jnp.bfloat16),
                               v_ref[...].astype(jnp.bfloat16),
                               preferred_element_type=jnp.float32)

    @pl.when(kt == pl.num_programs(1) - 1)
    def _finalize():
        o_ref[...] = acc_ref[...].astype(o_ref.dtype)


def scaled_dot_product_attention(query, key, value, dim: int = 8):
    """Pallas implementation of ScaledDotProductAttention.forward."""
    assert query.ndim == 3 and key.ndim == 3 and value.ndim == 3
    B, Tq, D = query.shape
    Bk, Tk, Dk = key.shape
    Bv, Tkv, Dv = value.shape
    assert B == Bk == Bv and Tk == Tkv and D == Dk
    # NOTE: matches the module: scale uses the constructor `dim`, not query.shape[-1].
    scale = 1.0 / float(np.sqrt(dim))

    # Lane-dense padded sizes (zero padding is exact for these semantics: padded
    # feature columns add 0 to scores; padded K columns get uniform batch-softmax
    # weights but multiply zero V rows; padded Q rows are sliced off).
    d_p = _round_up(D, _LANE)
    dv_p = _round_up(Dv, _LANE)
    tk_blk = _LANE
    tk_p = _round_up(Tk, tk_blk)
    tq_blk = min(_LANE, _round_up(Tq, _SUBLANE))
    tq_p = _round_up(Tq, tq_blk)

    q = jnp.pad(query, ((0, 0), (0, tq_p - Tq), (0, d_p - D)))
    k = jnp.pad(key,   ((0, 0), (0, tk_p - Tk), (0, d_p - D)))
    v = jnp.pad(value, ((0, 0), (0, tk_p - Tk), (0, dv_p - Dv)))

    grid = (tq_p // tq_blk, tk_p // tk_blk)
    kernel = functools.partial(_sdpa_kernel, scale=scale)

    out = pl.pallas_call(
        kernel,
        out_shape=jax.ShapeDtypeStruct((B, tq_p, dv_p), query.dtype),
        grid_spec=pltpu.PrefetchScalarGridSpec(
            num_scalar_prefetch=0,
            grid=grid,
            in_specs=[
                pl.BlockSpec((B, tq_blk, d_p), lambda i, j: (0, i, 0)),
                pl.BlockSpec((B, tk_blk, d_p), lambda i, j: (0, j, 0)),
                pl.BlockSpec((B, tk_blk, dv_p), lambda i, j: (0, j, 0)),
            ],
            out_specs=pl.BlockSpec((B, tq_blk, dv_p), lambda i, j: (0, i, 0)),
            scratch_shapes=[pltpu.VMEM((B, tq_blk, dv_p), jnp.float32)],
        ),
        compiler_params=pltpu.CompilerParams(
            dimension_semantics=("parallel", "arbitrary"),
            vmem_limit_bytes=32 * 1024 * 1024,
        ),
    )(q, k, v)

    return out[:, :Tq, :Dv]


def _reference(query, key, value, dim: int = 8):
    # Pure-JAX f32 reference replicating the exact PyTorch semantics.
    scale = 1.0 / np.sqrt(float(dim))
    scores = jnp.einsum("bqd,bkd->bqk", query.astype(jnp.float32),
                        key.astype(jnp.float32)) * scale
    p = jax.nn.softmax(scores, axis=0)  # legacy implicit dim=0 for 3-D input
    return jnp.einsum("bqk,bkd->bqd", p, value.astype(jnp.float32))


if __name__ == "__main__":
    key0 = jax.random.PRNGKey(0)

    # --- Test 1: small shapes consistent with the module (batch=2, seq=8, dim=8).
    B, Tq, Tk, D = 2, 8, 8, 8
    kq, kk, kv = jax.random.split(key0, 3)
    query = jax.random.normal(kq, (B, Tq, D), dtype=jnp.float32)
    key_t = jax.random.normal(kk, (B, Tk, D), dtype=jnp.float32)
    value = jax.random.normal(kv, (B, Tk, D), dtype=jnp.float32)

    out = scaled_dot_product_attention(query, key_t, value, dim=D)
    out = jax.block_until_ready(out)

    ref = _reference(query, key_t, value, dim=D)
    # Tolerance loosened vs f32 reference because matmul operands are bf16 on the MXU.
    np.testing.assert_allclose(np.asarray(out), np.asarray(ref),
                               rtol=5e-2, atol=5e-2)

    # --- Test 2: exercise the multi-tile grid / Tk accumulation / padding path.
    B2, Tq2, Tk2, D2, Dv2 = 2, 200, 260, 40, 24
    k1, k2, k3 = jax.random.split(jax.random.PRNGKey(1), 3)
    q2 = jax.random.normal(k1, (B2, Tq2, D2), dtype=jnp.float32)
    kk2 = jax.random.normal(k2, (B2, Tk2, D2), dtype=jnp.float32)
    v2 = jax.random.normal(k3, (B2, Tk2, Dv2), dtype=jnp.float32)

    out2 = jax.block_until_ready(scaled_dot_product_attention(q2, kk2, v2, dim=D2))
    ref2 = _reference(q2, kk2, v2, dim=D2)
    rel = (np.linalg.norm(np.asarray(out2) - np.asarray(ref2))
           / np.linalg.norm(np.asarray(ref2)))
    assert rel < 5e-2, f"relative error too large: {rel}"

    print("KERNEL_OK")
</pallas_src>

<mosaic_0001>
module attributes {stable_mosaic.version = 11 : i64} {
  func.func @_sdpa_kernel(%arg0: i32, %arg1: i32, %arg2: memref<2x8x128xf32, #tpu.memory_space<vmem>>, %arg3: memref<2x128x128xf32, #tpu.memory_space<vmem>>, %arg4: memref<2x128x128xf32, #tpu.memory_space<vmem>>, %arg5: memref<2x8x128xf32, #tpu.memory_space<vmem>>, %arg6: memref<2x8x128xf32, #tpu.memory_space<vmem>>) attributes {dimension_semantics = [#tpu.dimension_semantics<parallel>, #tpu.dimension_semantics<arbitrary>], iteration_bounds = array<i64: 1, 1>, scalar_prefetch = 0 : i64, scratch_operands = 1 : i64, tpu.core_type = #tpu.core_type<tc>, window_params = [{transform_indices = @transform_0, window_bounds = array<i64: 2, 8, 128>}, {transform_indices = @transform_1, window_bounds = array<i64: 2, 128, 128>}, {transform_indices = @transform_2, window_bounds = array<i64: 2, 128, 128>}, {transform_indices = @transform_3, window_bounds = array<i64: 2, 8, 128>}]} {
    %c0_i32 = arith.constant 0 : i32
    %0 = arith.cmpi eq, %arg1, %c0_i32 : i32
    %1 = arith.extui %0 : i1 to i32
    %c0_i32_0 = arith.constant 0 : i32
    %2 = arith.cmpi ne, %1, %c0_i32_0 : i32
    scf.if %2 {
      %cst_21 = arith.constant 0.000000e+00 : f32
      %30 = vector.broadcast %cst_21 : f32 to vector<2x8x128xf32>
      %c0_22 = arith.constant 0 : index
      %c0_23 = arith.constant 0 : index
      %c0_24 = arith.constant 0 : index
      %31 = vector.load %arg6[%c0_22, %c0_23, %c0_24] : memref<2x8x128xf32, #tpu.memory_space<vmem>>, vector<2x8x128xf32>
      tpu.vector_store %arg6[%c0_22, %c0_23, %c0_24], %30 {strides = array<i32>} : memref<2x8x128xf32, #tpu.memory_space<vmem>>, vector<2x8x128xf32>,
    } else {
    }
    %c0 = arith.constant 0 : index
    %c0_1 = arith.constant 0 : index
    %c0_2 = arith.constant 0 : index
    %3 = vector.load %arg2[%c0, %c0_1, %c0_2] : memref<2x8x128xf32, #tpu.memory_space<vmem>>, vector<2x8x128xf32>
    %cst = arith.constant 0.353553385 : f32
    %4 = vector.broadcast %cst : f32 to vector<2x8x128xf32>
    %5 = arith.mulf %3, %4 : vector<2x8x128xf32>
    %6 = arith.truncf %5 : vector<2x8x128xf32> to vector<2x8x128xbf16>
    %c0_3 = arith.constant 0 : index
    %c0_4 = arith.constant 0 : index
    %c0_5 = arith.constant 0 : index
    %7 = vector.load %arg3[%c0_3, %c0_4, %c0_5] : memref<2x128x128xf32, #tpu.memory_space<vmem>>, vector<2x128x128xf32>
    %8 = arith.truncf %7 : vector<2x128x128xf32> to vector<2x128x128xbf16>
    "tpu.trace_start"() <{level = 10 : i32, message = "bqd,bkd->bqk"}> : () -> ()
    %cst_6 = arith.constant dense<0.000000e+00> : vector<2x8x128xf32>
    %9 = tpu.matmul %6, %8, %cst_6 {dimension_numbers = #tpu.dot_dimension_numbers<[2], [2], [1], [1], [0, 0, 0, 1, 1, 1], [0], [0]>} : vector<2x8x128xbf16>, vector<2x128x128xbf16>, vector<2x8x128xf32> -> vector<2x8x128xf32>
    "tpu.trace_stop"() : () -> ()
    %cst_7 = arith.constant dense<0xFF800000> : vector<8x128xf32>
    %10 = vector.multi_reduction <maximumf>, %9, %cst_7 [0] : vector<2x8x128xf32> to vector<8x128xf32>
    %11 = vector.shape_cast %10 : vector<8x128xf32> to vector<1x8x128xf32>
    %12 = vector.broadcast %11 : vector<1x8x128xf32> to vector<2x8x128xf32>
    %13 = arith.subf %9, %12 : vector<2x8x128xf32>
    %14 = math.exp %13 : vector<2x8x128xf32>
    %cst_8 = arith.constant dense<0.000000e+00> : vector<8x128xf32>
    %15 = vector.multi_reduction <add>, %14, %cst_8 [0] : vector<2x8x128xf32> to vector<8x128xf32>
    %16 = vector.shape_cast %15 : vector<8x128xf32> to vector<1x8x128xf32>
    %17 = tpu.reciprocal %16 {approx = true} : vector<1x8x128xf32> -> vector<1x8x128xf32>
    %18 = vector.broadcast %17 : vector<1x8x128xf32> to vector<2x8x128xf32>
    %19 = arith.mulf %14, %18 : vector<2x8x128xf32>
    %c0_9 = arith.constant 0 : index
    %c0_10 = arith.constant 0 : index
    %c0_11 = arith.constant 0 : index
    %20 = vector.load %arg6[%c0_9, %c0_10, %c0_11] : memref<2x8x128xf32, #tpu.memory_space<vmem>>, vector<2x8x128xf32>
    %21 = arith.truncf %19 : vector<2x8x128xf32> to vector<2x8x128xbf16>
    %c0_12 = arith.constant 0 : index
    %c0_13 = arith.constant 0 : index
    %c0_14 = arith.constant 0 : index
    %22 = vector.load %arg4[%c0_12, %c0_13, %c0_14] : memref<2x128x128xf32, #tpu.memory_space<vmem>>, vector<2x128x128xf32>
    %23 = arith.truncf %22 : vector<2x128x128xf32> to vector<2x128x128xbf16>
    "tpu.trace_start"() <{level = 10 : i32, message = "bqk,bkd->bqd"}> : () -> ()
    %cst_15 = arith.constant dense<0.000000e+00> : vector<2x8x128xf32>
    %24 = tpu.matmul %21, %23, %cst_15 {dimension_numbers = #tpu.dot_dimension_numbers<[2], [1], [1], [2], [0, 0, 0, 1, 1, 2], [0], [0]>} : vector<2x8x128xbf16>, vector<2x128x128xbf16>, vector<2x8x128xf32> -> vector<2x8x128xf32>
    "tpu.trace_stop"() : () -> ()
    %25 = arith.addf %20, %24 : vector<2x8x128xf32>
    %c0_16 = arith.constant 0 : index
    %c0_17 = arith.constant 0 : index
    %c0_18 = arith.constant 0 : index
    %26 = vector.load %arg6[%c0_16, %c0_17, %c0_18] : memref<2x8x128xf32, #tpu.memory_space<vmem>>, vector<2x8x128xf32>
    tpu.vector_store %arg6[%c0_16, %c0_17, %c0_18], %25 {strides = array<i32>} : memref<2x8x128xf32, #tpu.memory_space<vmem>>, vector<2x8x128xf32>,
    %c0_i32_19 = arith.constant 0 : i32
    %27 = arith.cmpi eq, %arg1, %c0_i32_19 : i32
    %28 = arith.extui %27 : i1 to i32
    %c0_i32_20 = arith.constant 0 : i32
    %29 = arith.cmpi ne, %28, %c0_i32_20 : i32
    scf.if %29 {
      %c0_21 = arith.constant 0 : index
      %c0_22 = arith.constant 0 : index
      %c0_23 = arith.constant 0 : index
      %30 = vector.load %arg6[%c0_21, %c0_22, %c0_23] : memref<2x8x128xf32, #tpu.memory_space<vmem>>, vector<2x8x128xf32>
      %c0_24 = arith.constant 0 : index
      %c0_25 = arith.constant 0 : index
      %c0_26 = arith.constant 0 : index
      %31 = vector.load %arg5[%c0_24, %c0_25, %c0_26] : memref<2x8x128xf32, #tpu.memory_space<vmem>>, vector<2x8x128xf32>
      tpu.vector_store %arg5[%c0_24, %c0_25, %c0_26], %30 {strides = array<i32>} : memref<2x8x128xf32, #tpu.memory_space<vmem>>, vector<2x8x128xf32>,
    } else {
    }
    return
  }
  func.func @transform_0(%arg0: i32, %arg1: i32) -> (i32, i32, i32) {
    %c0_i32 = arith.constant 0 : i32
    %c0_i32_0 = arith.constant 0 : i32
    %c0_i32_1 = arith.constant 0 : i32
    return %c0_i32, %arg0, %c0_i32_0 : i32, i32, i32
  }
  func.func @transform_1(%arg0: i32, %arg1: i32) -> (i32, i32, i32) {
    %c0_i32 = arith.constant 0 : i32
    %c0_i32_0 = arith.constant 0 : i32
    %c0_i32_1 = arith.constant 0 : i32
    return %c0_i32, %arg1, %c0_i32_0 : i32, i32, i32
  }
  func.func @transform_2(%arg0: i32, %arg1: i32) -> (i32, i32, i32) {
    %c0_i32 = arith.constant 0 : i32
    %c0_i32_0 = arith.constant 0 : i32
    %c0_i32_1 = arith.constant 0 : i32
    return %c0_i32, %arg1, %c0_i32_0 : i32, i32, i32
  }
  func.func @transform_3(%arg0: i32, %arg1: i32) -> (i32, i32, i32) {
    %c0_i32 = arith.constant 0 : i32
    %c0_i32_0 = arith.constant 0 : i32
    %c0_i32_1 = arith.constant 0 : i32
    return %c0_i32, %arg0, %c0_i32_0 : i32, i32, i32
  }
}

</mosaic_0001>

<bundles_post_ra>
// kernel: tpu_custom_call.1
= control target key start
LH: loop header
LB: loop body
LE: loop exit
PB: predicated region body
PF: predicated region fallthrough
CT: control target
= control target key end

     0   :  { %8 = vsyncpa [#allocation4], 0  ;;  %s677_s0 = inlined_call_operand.hbm [shape: f32[2,8,128], index: 0, kind: input, shape index: {}]   ;;  %s678_s1 = inlined_call_operand.hbm [shape: f32[2,128,128], index: 1, kind: input, shape index: {}]   ;;  %s679_s2 = inlined_call_operand.hbm [shape: f32[2,128,128], index: 2, kind: input, shape index: {}]   ;;  %s680_s3 = inlined_call_operand.hbm [shape: f32[2,8,128], index: 3, kind: output, shape index: {}]  }
   0x1   :  { %9 = vsyncpa [#allocation7], 0 }
   0x2   :  { %10 = vsyncpa [#allocation5], 0  ;;  %s585_s12 = smov [#allocation6]   ;;  %s586_s14 = smov [#allocation3]  }
   0x3   :  { %s28_s13 = sshll.u32 %s585_s12, 4  ;;  %s16_s15 = sshll.u32 %s586_s14, 4  ;;  %s29_s13 = int_to_ptr.vmem [resolvable:$true] %s28_s13  ;;  %s17_s15 = int_to_ptr.vmem [resolvable:$true] %s16_s15 }
   0x4   :  { %s507_s16 = scalar_lea.vmem %s29_s13, 4096  ;;  %p512_p1 = scmp.lt.s32.totalorder %s29_s13, %s29_s13 }
   0x5   :  { %p508_p0 = scmp.ne.s32.totalorder %s29_s13, %s507_s16  ;;  %p513_p2 = scmp.lt.s32.totalorder %s507_s16, %s507_s16 }
   0x7   :  { %p514_p3 = por %p513_p2, %p512_p1 }
   0x9   :  { %p515_p4 = pnand %p514_p3, %p508_p0 }
   0xb   :  { %518 = shalt.err (!%p515_p4)
}
   0xc   :  { %s587_s17 = smov 128   ;;  %s588_s18 = smov 8  }
   0xd   :  { %34 = dma.hbm_to_vmem [thread:$0]  %s678_s1, 4096, %s29_s13, [#allocation7], %s587_s17, %s587_s17, %s588_s18  }
   0xe   :  { %s527_s21 = scalar_lea.vmem %s17_s15, 256  ;;  %p532_p6 = scmp.lt.s32.totalorder %s17_s15, %s17_s15 }
   0xf   :  { %p528_p5 = scmp.ne.s32.totalorder %s17_s15, %s527_s21  ;;  %p533_p7 = scmp.lt.s32.totalorder %s527_s21, %s527_s21 }
  0x11   :  { %p534_p8 = por %p533_p7, %p532_p6 }
  0x13   :  { %p535_p9 = pnand %p534_p8, %p528_p5 }
  0x15   :  { %538 = shalt.err (!%p535_p9)
}
  0x16   :  { %22 = dma.hbm_to_vmem [thread:$0]  %s677_s0, 256, %s17_s15, [#allocation4], %s587_s17, %s587_s17, %s588_s18  }
  0x17   :  { %s589_s24 = smov [#allocation8]  }
  0x18   :  { %s40_s25 = sshll.u32 %s589_s24, 4  ;;  %s41_s25 = int_to_ptr.vmem [resolvable:$true] %s40_s25 }
  0x19   :  { %s547_s26 = scalar_lea.vmem %s41_s25, 4096  ;;  %p552_p11 = scmp.lt.s32.totalorder %s41_s25, %s41_s25 }
  0x1a   :  { %p548_p10 = scmp.ne.s32.totalorder %s41_s25, %s547_s26  ;;  %p553_p12 = scmp.lt.s32.totalorder %s547_s26, %s547_s26 }
  0x1c   :  { %p554_p13 = por %p553_p12, %p552_p11 }
  0x1e   :  { %p555_p0 = pnand %p554_p13, %p548_p10 }
  0x20   :  { %558 = shalt.err (!%p555_p0)
}
  0x21   :  { %46 = dma.hbm_to_vmem [thread:$0]  %s679_s2, 4096, %s41_s25, [#allocation7], %s587_s17, %s587_s17, %s588_s18  }
  0x22   :  { %579 = dma.done.wait [#allocation4], 256  }
  0x23   :  { %580 = vsyncadd [#allocation4], 4294967040 }
  0x24   :  { %581 = dma.done.wait [#allocation7], 8192  }
  0x25   :  { %582 = vsyncadd [#allocation7], 4294959104  ;;  %v590_v0 = vmov 0.0   ;;  %vm591_vm0 = vmmov 0   ;;  %v83_v1 = vld [vmem:[#allocation6 + $0x70] sm:$0xff]  ;;  %v84_v2 = vld [vmem:[#allocation6 + $0x78] sm:$0xff] }
  0x26   :  { %405 = vmatprep.subr.bf16.mxu0 %v590_v0  ;;  %425 = vmatprep.subr.bf16.mxu1 %v590_v0  ;;  %v99_v3 = vld [vmem:[#allocation6 + $0xf0] sm:$0xff]  ;;  %v108_v4 = vpack.c.bf16 %v84_v2, %v83_v1  ;;  %v100_v5 = vld [vmem:[#allocation6 + $0xf8] sm:$0xff]  ;;  %v81_v7 = vld [vmem:[#allocation6 + $0x60] sm:$0xff]  ;;  %s592_s0 = smov [#allocation9]  }
  0x27   :  { %421 = vmatprep.mubr.msk.bf16.mxu0 %vm591_vm0, %v590_v0  ;;  %441 = vmatprep.mubr.msk.bf16.mxu1 %vm591_vm0, %v590_v0  ;;  %v116_v6 = vpack.c.bf16 %v100_v5, %v99_v3  ;;  %v82_v8 = vld [vmem:[#allocation6 + $0x68] sm:$0xff]  ;;  %v97_v9 = vld [vmem:[#allocation6 + $0xe0] sm:$0xff]  ;;  %v79_v13 = vld [vmem:[#allocation6 + $0x50] sm:$0xff]  ;;  %s356_s2 = sshll.u32 %s592_s0, 4  ;;  %s357_s2 = int_to_ptr.vmem [resolvable:$true] %s356_s2 }
  0x28   :  { %406 = vmatpush3.bf16.xpose.msra.mxu0 %v108_v4  ;;  %v98_v10 = vld [vmem:[#allocation6 + $0xe8] sm:$0xff]  ;;  %v107_v11 = vpack.c.bf16 %v82_v8, %v81_v7  ;;  %v80_v14 = vld [vmem:[#allocation6 + $0x58] sm:$0xff]  ;;  %v95_v15 = vld [vmem:[#allocation6 + $0xd0] sm:$0xff]  ;;  %s559_s28 = scalar_lea.vmem %s357_s2, 256  ;;  %p564_p2 = scmp.lt.s32.totalorder %s357_s2, %s357_s2 }
  0x29   :  { %426 = vmatpush3.bf16.xpose.msra.mxu1 %v116_v6  ;;  %407 = vmatprep.subr.bf16.mxu0 %v590_v0  ;;  %v115_v12 = vpack.c.bf16 %v98_v10, %v97_v9  ;;  %v96_v16 = vld [vmem:[#allocation6 + $0xd8] sm:$0xff]  ;;  %v106_v17 = vpack.c.bf16 %v80_v14, %v79_v13  ;;  %v77_v19 = vld [vmem:[#allocation6 + $0x40] sm:$0xff]  ;;  %v78_v20 = vld [vmem:[#allocation6 + $0x48] sm:$0xff]  ;;  %p560_p1 = scmp.ne.s32.totalorder %s357_s2, %s559_s28  ;;  %p565_p3 = scmp.lt.s32.totalorder %s559_s28, %s559_s28 }
  0x2a   :  { %427 = vmatprep.subr.bf16.mxu1 %v590_v0  ;;  %v114_v18 = vpack.c.bf16 %v96_v16, %v95_v15  ;;  %v93_v21 = vld [vmem:[#allocation6 + $0xc0] sm:$0xff]  ;;  %v94_v22 = vld [vmem:[#allocation6 + $0xc8] sm:$0xff]  ;;  %v105_v23 = vpack.c.bf16 %v78_v20, %v77_v19  ;;  %v75_v25 = vld [vmem:[#allocation6 + $0x30] sm:$0xff] }
  0x2b   :  { %v113_v24 = vpack.c.bf16 %v94_v22, %v93_v21  ;;  %v76_v26 = vld [vmem:[#allocation6 + $0x38] sm:$0xff]  ;;  %v91_v27 = vld [vmem:[#allocation6 + $0xb0] sm:$0xff]  ;;  %v73_v31 = vld [vmem:[#allocation6 + $0x20] sm:$0xff]  ;;  %p566_p4 = por %p565_p3, %p564_p2 }
  0x2c   :  { %v92_v28 = vld [vmem:[#allocation6 + $0xb8] sm:$0xff]  ;;  %v104_v29 = vpack.c.bf16 %v76_v26, %v75_v25  ;;  %v74_v32 = vld [vmem:[#allocation6 + $0x28] sm:$0xff]  ;;  %v89_v33 = vld [vmem:[#allocation6 + $0xa0] sm:$0xff] }
  0x2d   :  { %v112_v30 = vpack.c.bf16 %v92_v28, %v91_v27  ;;  %v90_v34 = vld [vmem:[#allocation6 + $0xa8] sm:$0xff]  ;;  %v103_v35 = vpack.c.bf16 %v74_v32, %v73_v31  ;;  %v71_v37 = vld [vmem:[#allocation6 + $0x10] sm:$0xff]  ;;  %v72_v38 = vld [vmem:[#allocation6 + $0x18] sm:$0xff]  ;;  %p567_p5 = pnand %p566_p4, %p560_p1 }
  0x2e   :  { %v111_v36 = vpack.c.bf16 %v90_v34, %v89_v33  ;;  %v87_v39 = vld [vmem:[#allocation6 + $0x90] sm:$0xff]  ;;  %v88_v40 = vld [vmem:[#allocation6 + $0x98] sm:$0xff]  ;;  %v102_v41 = vpack.c.bf16 %v72_v38, %v71_v37  ;;  %v69_v43 = vld [vmem:[#allocation6] sm:$0xff] }
  0x2f   :  { %v110_v42 = vpack.c.bf16 %v88_v40, %v87_v39  ;;  %v70_v44 = vld [vmem:[#allocation6 + $0x8] sm:$0xff]  ;;  %v85_v45 = vld [vmem:[#allocation6 + $0x80] sm:$0xff]  ;;  %v63_v48 = vld [vmem:[#allocation3] sm:$0xff] }
  0x30   :  { %408 = vmatpush3.bf16.xpose.msra.mxu0 %v107_v11  ;;  %v86_v46 = vld [vmem:[#allocation6 + $0x88] sm:$0xff]  ;;  %v101_v47 = vpack.c.bf16 %v70_v44, %v69_v43  ;;  %v64_v50 = vld [vmem:[#allocation3 + $0x8] sm:$0xff]  ;;  %v65_v51 = vmul.f32 0.35355338, %v63_v48  ;;  %v226_v55 = vld [vmem:[#allocation8 + $0x70] sm:$0xff] }
  0x31   :  { %428 = vmatpush3.bf16.xpose.msra.mxu1 %v115_v12  ;;  %409 = vmatprep.subr.bf16.mxu0 %v590_v0  ;;  %v109_v49 = vpack.c.bf16 %v86_v46, %v85_v45  ;;  %v66_v52 = vmul.f32 0.35355338, %v64_v50  ;;  %v227_v56 = vld [vmem:[#allocation8 + $0x78] sm:$0xff]  ;;  %v242_v57 = vld [vmem:[#allocation8 + $0xf0] sm:$0xff]  ;;  %v224_v61 = vld [vmem:[#allocation8 + $0x60] sm:$0xff] }
  0x32   :  { %429 = vmatprep.subr.bf16.mxu1 %v590_v0  ;;  %v67_v53 = vpack.c.bf16 %v65_v51, %v65_v51  ;;  %v251_v58 = vpack.c.bf16 %v227_v56, %v226_v55  ;;  %v243_v59 = vld [vmem:[#allocation8 + $0xf8] sm:$0xff]  ;;  %v225_v62 = vld [vmem:[#allocation8 + $0x68] sm:$0xff]  ;;  %v240_v63 = vld [vmem:[#allocation8 + $0xe0] sm:$0xff] }
  0x33   :  { %v68_v54 = vpack.c.bf16 %v66_v52, %v66_v52  ;;  %v259_v60 = vpack.c.bf16 %v243_v59, %v242_v57  ;;  %v250_v1 = vpack.c.bf16 %v225_v62, %v224_v61  ;;  %v241_v2 = vld [vmem:[#allocation8 + $0xe8] sm:$0xff]  ;;  %v222_v4 = vld [vmem:[#allocation8 + $0x50] sm:$0xff]  ;;  %v223_v5 = vld [vmem:[#allocation8 + $0x58] sm:$0xff] }
  0x34   :  { %v258_v3 = vpack.c.bf16 %v241_v2, %v240_v63  ;;  %v238_v6 = vld [vmem:[#allocation8 + $0xd0] sm:$0xff]  ;;  %v249_v7 = vpack.c.bf16 %v223_v5, %v222_v4  ;;  %v239_v8 = vld [vmem:[#allocation8 + $0xd8] sm:$0xff]  ;;  %v220_v10 = vld [vmem:[#allocation8 + $0x40] sm:$0xff] }
  0x35   :  { %v257_v9 = vpack.c.bf16 %v239_v8, %v238_v6  ;;  %v221_v11 = vld [vmem:[#allocation8 + $0x48] sm:$0xff]  ;;  %v236_v12 = vld [vmem:[#allocation8 + $0xc0] sm:$0xff]  ;;  %v218_v16 = vld [vmem:[#allocation8 + $0x30] sm:$0xff] }
  0x36   :  { %v248_v13 = vpack.c.bf16 %v221_v11, %v220_v10  ;;  %v237_v14 = vld [vmem:[#allocation8 + $0xc8] sm:$0xff]  ;;  %v235_v20 = vld [vmem:[#allocation8 + $0xb8] sm:$0xff]  ;;  %v216_v21 = vld [vmem:[#allocation8 + $0x20] sm:$0xff] }
  0x37   :  { %v256_v15 = vpack.c.bf16 %v237_v14, %v236_v12  ;;  %v217_v22 = vld [vmem:[#allocation8 + $0x28] sm:$0xff]  ;;  %v214_v28 = vld [vmem:[#allocation8 + $0x10] sm:$0xff]  ;;  %v231_v31 = vld [vmem:[#allocation8 + $0x98] sm:$0xff] }
  0x38   :  { %410 = vmatpush3.bf16.xpose.msra.mxu0 %v106_v17  ;;  %v219_v17 = vld [vmem:[#allocation8 + $0x38] sm:$0xff]  ;;  %v233_v25 = vld [vmem:[#allocation8 + $0xa8] sm:$0xff]  ;;  %v246_v26 = vpack.c.bf16 %v217_v22, %v216_v21  ;;  %v212_v34 = vld [vmem:[#allocation8] sm:$0xff] }
  0x39   :  { %430 = vmatpush3.bf16.xpose.msra.mxu1 %v114_v18  ;;  %411 = vmatprep.subr.bf16.mxu0 %v590_v0  ;;  %v234_v18 = vld [vmem:[#allocation8 + $0xb0] sm:$0xff]  ;;  %v247_v19 = vpack.c.bf16 %v219_v17, %v218_v16  ;;  %v229_v37 = vld [vmem:[#allocation8 + $0x88] sm:$0xff] }
  0x3a   :  { %431 = vmatprep.subr.bf16.mxu1 %v590_v0 }
  0x40   :  { %412 = vmatpush3.bf16.xpose.msra.mxu0 %v105_v23  ;;  %v255_v23 = vpack.c.bf16 %v235_v20, %v234_v18 }
  0x41   :  { %432 = vmatpush3.bf16.xpose.msra.mxu1 %v113_v24  ;;  %413 = vmatprep.subr.bf16.mxu0 %v590_v0  ;;  %v232_v24 = vld [vmem:[#allocation8 + $0xa0] sm:$0xff] }
  0x42   :  { %433 = vmatprep.subr.bf16.mxu1 %v590_v0  ;;  %v254_v27 = vpack.c.bf16 %v233_v25, %v232_v24 }
  0x48   :  { %414 = vmatpush3.bf16.xpose.msra.mxu0 %v104_v29  ;;  %v215_v29 = vld [vmem:[#allocation8 + $0x18] sm:$0xff] }
  0x49   :  { %434 = vmatpush3.bf16.xpose.msra.mxu1 %v112_v30  ;;  %415 = vmatprep.subr.bf16.mxu0 %v590_v0  ;;  %v230_v30 = vld [vmem:[#allocation8 + $0x90] sm:$0xff]  ;;  %v245_v32 = vpack.c.bf16 %v215_v29, %v214_v28 }
  0x4a   :  { %435 = vmatprep.subr.bf16.mxu1 %v590_v0  ;;  %v253_v33 = vpack.c.bf16 %v231_v31, %v230_v30 }
  0x50   :  { %416 = vmatpush3.bf16.xpose.msra.mxu0 %v103_v35  ;;  %v213_v35 = vld [vmem:[#allocation8 + $0x8] sm:$0xff] }
  0x51   :  { %436 = vmatpush3.bf16.xpose.msra.mxu1 %v111_v36  ;;  %417 = vmatprep.subr.bf16.mxu0 %v590_v0  ;;  %v228_v36 = vld [vmem:[#allocation8 + $0x80] sm:$0xff]  ;;  %v244_v38 = vpack.c.bf16 %v213_v35, %v212_v34 }
  0x52   :  { %437 = vmatprep.subr.bf16.mxu1 %v590_v0  ;;  %v252_v39 = vpack.c.bf16 %v229_v37, %v228_v36 }
  0x58   :  { %418 = vmatpush3.bf16.xpose.msra.mxu0 %v102_v41 }
  0x59   :  { %438 = vmatpush3.bf16.xpose.msra.mxu1 %v110_v42  ;;  %419 = vmatprep.subr.bf16.mxu0 %v590_v0 }
  0x5a   :  { %439 = vmatprep.subr.bf16.mxu1 %v590_v0 }
  0x60   :  { %420 = vmatpush3.bf16.xpose.msra.mxu0 %v101_v47 }
  0x61   :  { %440 = vmatpush3.bf16.xpose.msra.mxu1 %v109_v49  ;;  %445 = vmatprep.subr.bf16.mxu0 %v590_v0 }
  0x62   :  { %465 = vmatprep.subr.bf16.mxu1 %v590_v0 }
  0x67   :  { %422 = vmatmul.mubr.bf16.vlgmr.msra.gmra.mxu0 %v67_v53 }
  0x68   :  { %442 = vmatmul.mubr.bf16.vlgmr.msra.gmra.mxu1 %v68_v54  ;;  %461 = vmatprep.mubr.msk.bf16.mxu0 %vm591_vm0, %v590_v0 }
  0x69   :  { %481 = vmatprep.mubr.msk.bf16.mxu1 %vm591_vm0, %v590_v0  ;;  %446 = vmatpush3.bf16.msra.mxu0 %v251_v58 }
  0x6a   :  { %466 = vmatpush3.bf16.msra.mxu1 %v259_v60  ;;  %447 = vmatprep.subr.bf16.mxu0 %v590_v0 }
  0x6b   :  { %467 = vmatprep.subr.bf16.mxu1 %v590_v0 }
  0x6d   :  { %448 = vmatpush3.bf16.msra.mxu0 %v250_v1 }
  0x6e   :  { %468 = vmatpush3.bf16.msra.mxu1 %v258_v3  ;;  %449 = vmatprep.subr.bf16.mxu0 %v590_v0 }
  0x6f   :  { %469 = vmatprep.subr.bf16.mxu1 %v590_v0 }
  0x71   :  { %450 = vmatpush3.bf16.msra.mxu0 %v249_v7 }
  0x72   :  { %470 = vmatpush3.bf16.msra.mxu1 %v257_v9  ;;  %451 = vmatprep.subr.bf16.mxu0 %v590_v0 }
  0x73   :  { %471 = vmatprep.subr.bf16.mxu1 %v590_v0 }
  0x75   :  { %452 = vmatpush3.bf16.msra.mxu0 %v248_v13 }
  0x76   :  { %472 = vmatpush3.bf16.msra.mxu1 %v256_v15  ;;  %453 = vmatprep.subr.bf16.mxu0 %v590_v0 }
  0x77   :  { %473 = vmatprep.subr.bf16.mxu1 %v590_v0 }
  0x79   :  { %454 = vmatpush3.bf16.msra.mxu0 %v247_v19 }
  0x7a   :  { %474 = vmatpush3.bf16.msra.mxu1 %v255_v23  ;;  %455 = vmatprep.subr.bf16.mxu0 %v590_v0 }
  0x7b   :  { %475 = vmatprep.subr.bf16.mxu1 %v590_v0 }
  0x7d   :  { %456 = vmatpush3.bf16.msra.mxu0 %v246_v26 }
  0x7e   :  { %476 = vmatpush3.bf16.msra.mxu1 %v254_v27  ;;  %457 = vmatprep.subr.bf16.mxu0 %v590_v0 }
  0x7f   :  { %477 = vmatprep.subr.bf16.mxu1 %v590_v0 }
  0x81   :  { %458 = vmatpush3.bf16.msra.mxu0 %v245_v32 }
  0x82   :  { %478 = vmatpush3.bf16.msra.mxu1 %v253_v33  ;;  %459 = vmatprep.subr.bf16.mxu0 %v590_v0 }
  0x83   :  { %479 = vmatprep.subr.bf16.mxu1 %v590_v0 }
  0x85   :  { %460 = vmatpush3.bf16.msra.mxu0 %v244_v38 }
  0x86   :  { %480 = vmatpush3.bf16.msra.mxu1 %v252_v39 }
 0x127   :  { %v151_v40 = vpop.f32.mrf.mxu0 }
 0x128   :  { %v191_v41 = vpop.f32.mrf.mxu1 }
 0x129   :  { %v197_v42 = vmax.f32 %v151_v40, %v191_v41  ;;  %v423_v43 = vpop.f32.mrf.mxu0 }
 0x12a   :  { %v443_v44 = vpop.f32.mrf.mxu1 }
 0x12b   :  { %v198_v45 = vsub.f32 %v151_v40, %v197_v42  ;;  %v199_v46 = vsub.f32 %v191_v41, %v197_v42  ;;  %v154_v47 = vpop.f32.mrf.mxu0 }
 0x12c   :  { %v194_v48 = vpop.f32.mrf.mxu1 }
 0x12d   :  { %v200_v49 = vmul.f32 1.442695, %v198_v45  ;;  %v202_v50 = vmul.f32 1.442695, %v199_v46  ;;  %v424_v51 = vpop.f32.mrf.mxu0 }
 0x12e   :  { %v444_v52 = vpop.f32.mrf.mxu1 }
 0x12f   :  { %493 = vpow2.f32 %v200_v49 }
 0x130   :  { %495 = vpow2.f32 %v202_v50 }
 0x13c   :  { %v494_v53 = vpop.eup %493 }
 0x13d   :  { %v496_v54 = vpop.eup %495 }
 0x13e   :  { %v204_v0 = vadd.f32 %v496_v54, %v494_v53 }
 0x140   :  { %497 = vrcp.f32 %v204_v0 }
 0x14d   :  { %v498_v55 = vpop.eup %497 }
 0x14e   :  { %v206_v56 = vmul.f32 %v498_v55, %v494_v53  ;;  %v207_v57 = vmul.f32 %v498_v55, %v496_v54 }
 0x150   :  { %v210_v58 = vpack.c.bf16 %v206_v56, %v206_v56  ;;  %v211_v59 = vpack.c.bf16 %v207_v57, %v207_v57 }
 0x152   :  { %462 = vmatmul.mubr.bf16.vlgmr.msra.gmra.mxu0 %v210_v58  ;;  %482 = vmatmul.mubr.bf16.vlgmr.msra.gmra.mxu1 %v211_v59 }
 0x212   :  { %v294_v60 = vpop.f32.mrf.mxu0  ;;  %v334_v61 = vpop.f32.mrf.mxu1 }
 0x213   :  { %349 = vst [vmem:[#allocation9] sm:$0xff] %v294_v60  ;;  %350 = vst [vmem:[#allocation9 + $0x8] sm:$0xff] %v334_v61 }
 0x214   :  { %v463_v62 = vpop.f32.mrf.mxu0  ;;  %v483_v63 = vpop.f32.mrf.mxu1 }
 0x215   :  { %570 = shalt.err (!%p567_p5)
}
 0x216   :  { %362 = dma.vmem_to_hbm [thread:$0]  %s357_s2, 256, %s680_s3, [#allocation5], %s587_s17, %s587_s17, %s588_s18   ;;  %v297_v1 = vpop.f32.mrf.mxu0  ;;  %v337_v2 = vpop.f32.mrf.mxu1 }
 0x218   :  { %v464_v3 = vpop.f32.mrf.mxu0  ;;  %v484_v4 = vpop.f32.mrf.mxu1 }
 0x219   :  { %583 = dma.done.wait [#allocation5], 256  }
 0x21a   :  { %584 = vsyncadd [#allocation5], 4294967040 }
 0x21b   :  { %366 = vsyncpa [#allocation4], 1 }
 0x21c   :  { %367 = vsyncpa [#allocation7], 1 }
 0x21d   :  { %368 = vsyncpa [#allocation5], 1 }

</bundles_post_ra>
